<compile_context>
chip_gen: v7x
topology: tpu7x:2x2x1
jax: 0.10.0
libtpu: 0.0.40
codegen_flags: <defaults>
</compile_context>

<pallas_src>
import functools

import jax
import jax.numpy as jnp
import numpy as np
from jax.experimental import pallas as pl
from jax.experimental.pallas import tpu as pltpu


# --------------------------------------------------------------------------
# Kernel 1: GroupNorm statistics -> per-channel scale / shift (per image).
# --------------------------------------------------------------------------
def _gn_stats_kernel(x_ref, avg_ref, gamma_ref, beta_ref, a_ref, b_ref, *, eps):
    x = x_ref[0]                                          # (C, HW) f32
    # per-channel sums via lane reductions, group averaging via tiny matmuls
    csum = jnp.sum(x, axis=1, keepdims=True)              # (C, 1)
    mean_c = jnp.dot(avg_ref[...], csum,
                     preferred_element_type=jnp.float32)  # (C, 1) group mean
    d = x - mean_c
    css = jnp.sum(d * d, axis=1, keepdims=True)           # centered SS  (C, 1)
    var_c = jnp.dot(avg_ref[...], css,
                    preferred_element_type=jnp.float32)   # (C, 1) group var
    a = jax.lax.rsqrt(var_c + eps) * gamma_ref[...]       # scale
    a_ref[0] = a
    b_ref[0] = beta_ref[...] - mean_c * a                 # shift


# --------------------------------------------------------------------------
# Kernel 2: normalize tile + fused q|k|v projection (HW-tiled).
#   q, v emitted channel-major per head (A, tile); k transposed to (tile, A).
# --------------------------------------------------------------------------
def _norm_qkv_kernel(x_ref, a_ref, b_ref, wcat_ref, bcat_ref,
                     q_ref, k_ref, v_ref, *, head_size, att_size, n_ch):
    hn = (x_ref[0] * a_ref[0] + b_ref[0]).astype(jnp.bfloat16)      # (C, tp)
    # ONE fused projection: rows [0:C]=q (pre-scaled), [C:2C]=k, [2C:3C]=v
    qkv = jnp.dot(wcat_ref[...], hn,
                  preferred_element_type=jnp.float32) + bcat_ref[...]  # (3C, tp)
    for h in range(head_size):
        lo, hi = h * att_size, (h + 1) * att_size
        q_ref[0, h] = qkv[lo:hi, :].astype(jnp.bfloat16)                 # (A, tp)
        v_ref[0, h] = qkv[2 * n_ch + lo:2 * n_ch + hi, :].astype(jnp.bfloat16)
        # k goes token-major so the attention hot loop has no transposes
        k_ref[0, h] = jnp.transpose(
            qkv[n_ch + lo:n_ch + hi, :]).astype(jnp.bfloat16)            # (tp, A)


# --------------------------------------------------------------------------
# Kernel 3: flash attention (transposed domain) + proj_out + bias + residual.
#   grid = (B, n_q_tiles, n_kv_tiles), kv innermost.
# --------------------------------------------------------------------------
def _flash_attn_proj_kernel(x_ref, q_ref, k_ref, v_ref, wpt_ref, bp_ref,
                            o_ref, m_sc, l_sc, acc_sc, *, head_size, att_size):
    kv = pl.program_id(2)
    n_kv = pl.num_programs(2)

    @pl.when(kv == 0)
    def _init():
        m_sc[...] = jnp.full_like(m_sc, -jnp.inf)
        l_sc[...] = jnp.zeros_like(l_sc)
        acc_sc[...] = jnp.zeros_like(acc_sc)

    # heads folded into the body (no per-head grid axis)
    for h in range(head_size):
        lo, hi = h * att_size, (h + 1) * att_size
        qh = q_ref[0, h]                                  # (A, tq) bf16, scaled
        kh = k_ref[0, h]                                  # (tk, A) bf16
        vh = v_ref[0, h]                                  # (A, tk) bf16

        # S^T tile: plain (tk, A) @ (A, tq) matmul, no transposes in hot loop
        st = jnp.dot(kh, qh, preferred_element_type=jnp.float32)    # (tk, tq)

        m_prev = m_sc[h]                                             # (1, tq)
        m_new = jnp.maximum(m_prev, jnp.max(st, axis=0, keepdims=True))
        alpha = jnp.exp(m_prev - m_new)
        p = jnp.exp(st - m_new)                                      # (tk, tq)
        l_sc[h] = alpha * l_sc[h] + jnp.sum(p, axis=0, keepdims=True)
        # accumulator rows [h*A:(h+1)*A] hold head h's (A, tq) output
        acc_sc[lo:hi, :] = alpha * acc_sc[lo:hi, :] + jnp.dot(
            vh, p.astype(jnp.bfloat16), preferred_element_type=jnp.float32)
        m_sc[h] = m_new

    @pl.when(kv == n_kv - 1)
    def _finalize():
        for h in range(head_size):
            lo, hi = h * att_size, (h + 1) * att_size
            acc_sc[lo:hi, :] = acc_sc[lo:hi, :] / l_sc[h]    # exact normalize
        # single (C, C) @ (C, tq) proj_out, lane-dense output
        proj = jnp.dot(wpt_ref[...], acc_sc[...].astype(jnp.bfloat16),
                       preferred_element_type=jnp.float32)   # (C, tq)
        o_ref[0] = x_ref[0] + bp_ref[...] + proj             # residual + bias


# --------------------------------------------------------------------------
# Helpers
# --------------------------------------------------------------------------
def _choose_tile(n, target, multiple=128):
    """Largest divisor of n <= target that is a multiple of `multiple`
    (falling back to multiples of 8, then the full dim, which is always legal)."""
    for m in (multiple, 8):
        t = (min(n, target) // m) * m
        while t >= m:
            if n % t == 0:
                return t
            t -= m
    return n


def _default_vmem_limit():
    # ~96 MiB on 128 MiB parts (v5e/v6e), ~48 MiB on 64 MiB parts (v7x).
    try:
        cap = pltpu.get_tpu_info().vmem_capacity_bytes
        return min(int(cap * 3 // 4), 100 * 1024 * 1024)
    except Exception:
        return 64 * 1024 * 1024


# --------------------------------------------------------------------------
# Wrapper
# --------------------------------------------------------------------------
def multi_head_attn_block(x_nchw, params, *, head_size, num_groups=32,
                          eps=1e-6, q_tile=512, kv_tile=512, proj_tile=1024,
                          vmem_limit_bytes=None):
    """x_nchw: (B, C, H, W) float32.  Returns (B, C, H, W) float32."""
    B, C, H, W = x_nchw.shape
    HW = H * W
    assert C % head_size == 0 and C % num_groups == 0
    A = C // head_size
    scale = float(A) ** (-0.5)
    f32, bf16 = jnp.float32, jnp.bfloat16

    if vmem_limit_bytes is None:
        vmem_limit_bytes = _default_vmem_limit()

    tq = _choose_tile(HW, q_tile)
    tk = _choose_tile(HW, kv_tile)
    tp = _choose_tile(HW, proj_tile)
    n_q, n_kv, n_p = HW // tq, HW // tk, HW // tp

    # channel-major view of the input — a free reshape, no transpose
    x_cm = x_nchw.reshape(B, C, HW).astype(f32)

    # group-averaging matrix: avg[i,j] = 1/(HW*Cg) if channels i,j share a group
    gidx = np.arange(C) // (C // num_groups)
    same = (gidx[:, None] == gidx[None, :]).astype(np.float32)
    avg_mat = jnp.asarray(same / float(HW * (C // num_groups)))       # (C, C)

    gamma_c = params["gamma1"].reshape(C, 1).astype(f32)
    beta_c = params["beta1"].reshape(C, 1).astype(f32)

    # fused q|k|v weights (transposed: rows = output channels), scale folded in q
    w_cat_t = jnp.concatenate(
        [(params["wq"] * scale).T, params["wk"].T, params["wv"].T],
        axis=0).astype(bf16)                                          # (3C, C)
    b_cat = jnp.concatenate(
        [(params["bq"] * scale).reshape(C, 1),
         params["bk"].reshape(C, 1),
         params["bv"].reshape(C, 1)], axis=0).astype(f32)             # (3C, 1)
    wp_t = params["wp"].T.astype(bf16)                                # (C, C)
    bp_c = params["bp"].reshape(C, 1).astype(f32)                     # (C, 1)

    def cparams(sem):
        return pltpu.CompilerParams(dimension_semantics=sem,
                                    vmem_limit_bytes=vmem_limit_bytes)

    # ---------------- Kernel 1: GroupNorm stats ----------------
    gn_a, gn_b = pl.pallas_call(
        functools.partial(_gn_stats_kernel, eps=eps),
        grid=(B,),
        in_specs=[
            pl.BlockSpec((1, C, HW), lambda b: (b, 0, 0)),     # x (channel-major)
            pl.BlockSpec((C, C), lambda b: (0, 0)),            # group-avg matrix
            pl.BlockSpec((C, 1), lambda b: (0, 0)),            # gamma
            pl.BlockSpec((C, 1), lambda b: (0, 0)),            # beta
        ],
        out_specs=[pl.BlockSpec((1, C, 1), lambda b: (b, 0, 0))] * 2,
        out_shape=[jax.ShapeDtypeStruct((B, C, 1), f32)] * 2,
        compiler_params=cparams(("parallel",)),
    )(x_cm, avg_mat, gamma_c, beta_c)

    # ---------------- Kernel 2: normalize + fused q/k/v ----------------
    q_cm, k_tm, v_cm = pl.pallas_call(
        functools.partial(_norm_qkv_kernel, head_size=head_size,
                          att_size=A, n_ch=C),
        grid=(B, n_p),
        in_specs=[
            pl.BlockSpec((1, C, tp), lambda b, p: (b, 0, p)),       # x tile
            pl.BlockSpec((1, C, 1), lambda b, p: (b, 0, 0)),        # scale a
            pl.BlockSpec((1, C, 1), lambda b, p: (b, 0, 0)),        # shift b
            pl.BlockSpec((3 * C, C), lambda b, p: (0, 0)),          # Wq|Wk|Wv ^T
            pl.BlockSpec((3 * C, 1), lambda b, p: (0, 0)),          # bq|bk|bv
        ],
        out_specs=[
            pl.BlockSpec((1, head_size, A, tp), lambda b, p: (b, 0, 0, p)),  # q^T
            pl.BlockSpec((1, head_size, tp, A), lambda b, p: (b, 0, p, 0)),  # k
            pl.BlockSpec((1, head_size, A, tp), lambda b, p: (b, 0, 0, p)),  # v^T
        ],
        out_shape=[
            jax.ShapeDtypeStruct((B, head_size, A, HW), bf16),
            jax.ShapeDtypeStruct((B, head_size, HW, A), bf16),
            jax.ShapeDtypeStruct((B, head_size, A, HW), bf16),
        ],
        compiler_params=cparams(("parallel", "parallel")),
    )(x_cm, gn_a, gn_b, w_cat_t, b_cat)

    # ---------------- Kernel 3: flash attention + proj + residual ----------------
    out_cm = pl.pallas_call(
        functools.partial(_flash_attn_proj_kernel, head_size=head_size,
                          att_size=A),
        grid=(B, n_q, n_kv),
        in_specs=[
            pl.BlockSpec((1, C, tq), lambda b, qi, kv: (b, 0, qi)),            # x (residual)
            pl.BlockSpec((1, head_size, A, tq), lambda b, qi, kv: (b, 0, 0, qi)),  # q^T
            pl.BlockSpec((1, head_size, tk, A), lambda b, qi, kv: (b, 0, kv, 0)),  # k
            pl.BlockSpec((1, head_size, A, tk), lambda b, qi, kv: (b, 0, 0, kv)),  # v^T
            pl.BlockSpec((C, C), lambda b, qi, kv: (0, 0)),                    # Wp^T
            pl.BlockSpec((C, 1), lambda b, qi, kv: (0, 0)),                    # bp
        ],
        out_specs=pl.BlockSpec((1, C, tq), lambda b, qi, kv: (b, 0, qi)),
        out_shape=jax.ShapeDtypeStruct((B, C, HW), f32),
        scratch_shapes=[
            pltpu.VMEM((head_size, 1, tq), f32),   # running max  m^T
            pltpu.VMEM((head_size, 1, tq), f32),   # running sum  l^T
            pltpu.VMEM((C, tq), f32),              # running (P@V)^T accumulator
        ],
        compiler_params=cparams(("parallel", "parallel", "arbitrary")),
    )(x_cm, q_cm, k_tm, v_cm, wp_t, bp_c)

    # channel-major result -> NCHW is a free reshape
    return out_cm.reshape(B, C, H, W)


# --------------------------------------------------------------------------
# pure-JAX reference (module semantics, f32 throughout)
# --------------------------------------------------------------------------
def _reference(x_nchw, params, *, head_size, num_groups=32, eps=1e-6):
    B, C, H, W = x_nchw.shape
    HW = H * W
    A = C // head_size
    gsz = C // num_groups
    xg = x_nchw.reshape(B, num_groups, gsz * HW)
    mean = xg.mean(axis=-1, keepdims=True)
    var = xg.var(axis=-1, keepdims=True)
    hn = ((xg - mean) / jnp.sqrt(var + eps)).reshape(B, C, H, W)
    hn = hn * params["gamma1"].reshape(1, C, 1, 1) + params["beta1"].reshape(1, C, 1, 1)
    ht = jnp.transpose(hn, (0, 2, 3, 1)).reshape(B, HW, C)
    q = ht @ params["wq"] + params["bq"]
    k = ht @ params["wk"] + params["bk"]
    v = ht @ params["wv"] + params["bv"]
    split = lambda t: t.reshape(B, HW, head_size, A).transpose(0, 2, 1, 3)
    qh, kh, vh = split(q), split(k), split(v)
    s = (qh * (A ** -0.5)) @ jnp.swapaxes(kh, -1, -2)
    p = jax.nn.softmax(s, axis=-1)
    o = (p @ vh).transpose(0, 2, 1, 3).reshape(B, HW, C)
    proj = o @ params["wp"] + params["bp"]
    proj = jnp.transpose(proj.reshape(B, H, W, C), (0, 3, 1, 2))
    return x_nchw + proj


if __name__ == "__main__":
    B, C, H, W = 2, 64, 16, 16          # HW = 256
    head_size = 4                        # att_size A = 16
    key = jax.random.PRNGKey(0)
    ks = jax.random.split(key, 11)

    # deterministic synthetic parameters (conv weights stored as (C_in, C_out))
    params = {
        "gamma1": (1.0 + 0.1 * jax.random.normal(ks[0], (1, C))).astype(jnp.float32),
        "beta1": (0.05 * jax.random.normal(ks[1], (1, C))).astype(jnp.float32),
        "wq": (0.05 * jax.random.normal(ks[2], (C, C))).astype(jnp.float32),
        "bq": (0.01 * jax.random.normal(ks[3], (1, C))).astype(jnp.float32),
        "wk": (0.05 * jax.random.normal(ks[4], (C, C))).astype(jnp.float32),
        "bk": (0.01 * jax.random.normal(ks[5], (1, C))).astype(jnp.float32),
        "wv": (0.05 * jax.random.normal(ks[6], (C, C))).astype(jnp.float32),
        "bv": (0.01 * jax.random.normal(ks[7], (1, C))).astype(jnp.float32),
        "wp": (0.05 * jax.random.normal(ks[8], (C, C))).astype(jnp.float32),
        "bp": (0.01 * jax.random.normal(ks[9], (1, C))).astype(jnp.float32),
    }
    x = jax.random.normal(ks[10], (B, C, H, W), dtype=jnp.float32)

    out = multi_head_attn_block(x, params, head_size=head_size)
    out = jax.block_until_ready(out)

    ref = _reference(x, params, head_size=head_size)
    # matmuls run with bf16 operands (f32 accumulation) -> loosened tolerance
    np.testing.assert_allclose(np.asarray(out), np.asarray(ref),
                               atol=2e-2, rtol=2e-2)

    print("KERNEL_OK")
</pallas_src>

<mosaic_0001>
module attributes {stable_mosaic.version = 11 : i64} {
  func.func @_gn_stats_kernel(%arg0: i32, %arg1: memref<1x64x256xf32, #tpu.memory_space<vmem>>, %arg2: memref<64x64xf32, #tpu.memory_space<vmem>>, %arg3: memref<64x1xf32, #tpu.memory_space<vmem>>, %arg4: memref<64x1xf32, #tpu.memory_space<vmem>>, %arg5: memref<1x64x1xf32, #tpu.memory_space<vmem>>, %arg6: memref<1x64x1xf32, #tpu.memory_space<vmem>>) attributes {dimension_semantics = [#tpu.dimension_semantics<parallel>], iteration_bounds = array<i64: 2>, scalar_prefetch = 0 : i64, scratch_operands = 0 : i64, tpu.core_type = #tpu.core_type<tc>, window_params = [{transform_indices = @transform_0, window_bounds = array<i64: 1, 64, 256>}, {pipeline_mode = #tpu.pipeline_mode<synchronous>, transform_indices = @transform_1, window_bounds = array<i64: 64, 64>}, {pipeline_mode = #tpu.pipeline_mode<synchronous>, transform_indices = @transform_2, window_bounds = array<i64: 64, 1>}, {pipeline_mode = #tpu.pipeline_mode<synchronous>, transform_indices = @transform_3, window_bounds = array<i64: 64, 1>}, {transform_indices = @transform_4, window_bounds = array<i64: 1, 64, 1>}, {transform_indices = @transform_5, window_bounds = array<i64: 1, 64, 1>}]} {
    %c0 = arith.constant 0 : index
    %c0_0 = arith.constant 0 : index
    %c0_1 = arith.constant 0 : index
    %0 = vector.load %arg1[%c0, %c0_0, %c0_1] : memref<1x64x256xf32, #tpu.memory_space<vmem>>, vector<1x64x256xf32>
    %1 = vector.shape_cast %0 : vector<1x64x256xf32> to vector<64x256xf32>
    %cst = arith.constant dense<0.000000e+00> : vector<64xf32>
    %2 = vector.multi_reduction <add>, %1, %cst [1] : vector<64x256xf32> to vector<64xf32>
    %3 = vector.shape_cast %2 : vector<64xf32> to vector<64x1xf32>
    %c0_2 = arith.constant 0 : index
    %c0_3 = arith.constant 0 : index
    %4 = vector.load %arg2[%c0_2, %c0_3] : memref<64x64xf32, #tpu.memory_space<vmem>>, vector<64x64xf32>
    %cst_4 = arith.constant dense<0.000000e+00> : vector<64x1xf32>
    %5 = tpu.matmul %4, %3, %cst_4 {dimension_numbers = #tpu.dot_dimension_numbers<[1], [0], [0], [1], [0, 0, 1, 1], [], []>} : vector<64x64xf32>, vector<64x1xf32>, vector<64x1xf32> -> vector<64x1xf32>
    %6 = vector.broadcast %5 : vector<64x1xf32> to vector<64x256xf32>
    %7 = arith.subf %1, %6 : vector<64x256xf32>
    %8 = arith.mulf %7, %7 : vector<64x256xf32>
    %cst_5 = arith.constant dense<0.000000e+00> : vector<64xf32>
    %9 = vector.multi_reduction <add>, %8, %cst_5 [1] : vector<64x256xf32> to vector<64xf32>
    %10 = vector.shape_cast %9 : vector<64xf32> to vector<64x1xf32>
    %c0_6 = arith.constant 0 : index
    %c0_7 = arith.constant 0 : index
    %11 = vector.load %arg2[%c0_6, %c0_7] : memref<64x64xf32, #tpu.memory_space<vmem>>, vector<64x64xf32>
    %cst_8 = arith.constant dense<0.000000e+00> : vector<64x1xf32>
    %12 = tpu.matmul %11, %10, %cst_8 {dimension_numbers = #tpu.dot_dimension_numbers<[1], [0], [0], [1], [0, 0, 1, 1], [], []>} : vector<64x64xf32>, vector<64x1xf32>, vector<64x1xf32> -> vector<64x1xf32>
    %cst_9 = arith.constant 9.99999997E-7 : f32
    %13 = vector.broadcast %cst_9 : f32 to vector<64x1xf32>
    %14 = arith.addf %12, %13 : vector<64x1xf32>
    %15 = math.rsqrt %14 : vector<64x1xf32>
    %c0_10 = arith.constant 0 : index
    %c0_11 = arith.constant 0 : index
    %16 = vector.load %arg3[%c0_10, %c0_11] : memref<64x1xf32, #tpu.memory_space<vmem>>, vector<64x1xf32>
    %17 = arith.mulf %15, %16 : vector<64x1xf32>
    %c0_12 = arith.constant 0 : index
    %c0_13 = arith.constant 0 : index
    %c0_14 = arith.constant 0 : index
    %18 = vector.load %arg5[%c0_12, %c0_13, %c0_14] : memref<1x64x1xf32, #tpu.memory_space<vmem>>, vector<1x64x1xf32>
    %19 = vector.shape_cast %18 : vector<1x64x1xf32> to vector<64x1xf32>
    %20 = vector.shape_cast %17 : vector<64x1xf32> to vector<1x64x1xf32>
    tpu.vector_store %arg5[%c0_12, %c0_13, %c0_14], %20 {strides = array<i32>} : memref<1x64x1xf32, #tpu.memory_space<vmem>>, vector<1x64x1xf32>,
    %c0_15 = arith.constant 0 : index
    %c0_16 = arith.constant 0 : index
    %21 = vector.load %arg4[%c0_15, %c0_16] : memref<64x1xf32, #tpu.memory_space<vmem>>, vector<64x1xf32>
    %22 = arith.mulf %5, %17 : vector<64x1xf32>
    %23 = arith.subf %21, %22 : vector<64x1xf32>
    %c0_17 = arith.constant 0 : index
    %c0_18 = arith.constant 0 : index
    %c0_19 = arith.constant 0 : index
    %24 = vector.load %arg6[%c0_17, %c0_18, %c0_19] : memref<1x64x1xf32, #tpu.memory_space<vmem>>, vector<1x64x1xf32>
    %25 = vector.shape_cast %24 : vector<1x64x1xf32> to vector<64x1xf32>
    %26 = vector.shape_cast %23 : vector<64x1xf32> to vector<1x64x1xf32>
    tpu.vector_store %arg6[%c0_17, %c0_18, %c0_19], %26 {strides = array<i32>} : memref<1x64x1xf32, #tpu.memory_space<vmem>>, vector<1x64x1xf32>,
    return
  }
  func.func @transform_0(%arg0: i32) -> (i32, i32, i32) {
    %c0_i32 = arith.constant 0 : i32
    %c0_i32_0 = arith.constant 0 : i32
    %c0_i32_1 = arith.constant 0 : i32
    return %arg0, %c0_i32, %c0_i32_0 : i32, i32, i32
  }
  func.func @transform_1(%arg0: i32) -> (i32, i32) {
    %c0_i32 = arith.constant 0 : i32
    %c0_i32_0 = arith.constant 0 : i32
    %c0_i32_1 = arith.constant 0 : i32
    return %c0_i32, %c0_i32_0 : i32, i32
  }
  func.func @transform_2(%arg0: i32) -> (i32, i32) {
    %c0_i32 = arith.constant 0 : i32
    %c0_i32_0 = arith.constant 0 : i32
    %c0_i32_1 = arith.constant 0 : i32
    return %c0_i32, %c0_i32_0 : i32, i32
  }
  func.func @transform_3(%arg0: i32) -> (i32, i32) {
    %c0_i32 = arith.constant 0 : i32
    %c0_i32_0 = arith.constant 0 : i32
    %c0_i32_1 = arith.constant 0 : i32
    return %c0_i32, %c0_i32_0 : i32, i32
  }
  func.func @transform_4(%arg0: i32) -> (i32, i32, i32) {
    %c0_i32 = arith.constant 0 : i32
    %c0_i32_0 = arith.constant 0 : i32
    %c0_i32_1 = arith.constant 0 : i32
    return %arg0, %c0_i32, %c0_i32_0 : i32, i32, i32
  }
  func.func @transform_5(%arg0: i32) -> (i32, i32, i32) {
    %c0_i32 = arith.constant 0 : i32
    %c0_i32_0 = arith.constant 0 : i32
    %c0_i32_1 = arith.constant 0 : i32
    return %arg0, %c0_i32, %c0_i32_0 : i32, i32, i32
  }
}

</mosaic_0001>

<bundles_post_ra>
// kernel: tpu_custom_call.1
= control target key start
LH: loop header
LB: loop body
LE: loop exit
PB: predicated region body
PF: predicated region fallthrough
CT: control target
= control target key end

     0   :  { %11 = vsyncpa [#allocation3], 0  ;;  %s1958_s0 = inlined_call_operand.hbm [shape: f32[2,64,256], index: 0, kind: input, shape index: {}]   ;;  %s1959_s1 = inlined_call_operand.hbm [shape: f32[64,64], index: 1, kind: input, shape index: {}]   ;;  %s1960_s2 = inlined_call_operand.hbm [shape: f32[64,1], index: 2, kind: input, shape index: {}]   ;;  %s1961_s3 = inlined_call_operand.hbm [shape: f32[64,1], index: 3, kind: input, shape index: {}]   ;;  %s1962_s4 = inlined_call_operand.hbm [shape: f32[2,64,1], index: 4, kind: output, shape index: {0}]   ;;  %s1963_s5 = inlined_call_operand.hbm [shape: f32[2,64,1], index: 5, kind: output, shape index: {1}]  }
   0x1   :  { %13 = vsyncpa [#allocation3 + $0x1], 0 }
   0x2   :  { %14 = vsyncpa [#allocation6], 0 }
   0x3   :  { %15 = vsyncpa [#allocation9], 0 }
   0x4   :  { %16 = vsyncpa [#allocation4], 0 }
   0x5   :  { %18 = vsyncpa [#allocation4 + $0x1], 0 }
   0x6   :  { %19 = vsyncpa [#allocation12], 0 }
   0x7   :  { %21 = vsyncpa [#allocation12 + $0x1], 0  ;;  %s1446_s18 = smov 0   ;;  %s1448_s19 = smov 0  }
   0x8   :  { %s1450_s20 = smov 0   ;;  %s1452_s21 = smov 0  }
   0x9 LB: > { %s1467_s22 = sadd.s32 4294967295, %s1401_s21   ;;  %s911_s23 = sadd.s32 4294967294, %s1401_s21   ;;  %s1401_s21 = sphi %s1452_s21, %s1986_s21   ;;  %s1397_s20 = sphi %s1450_s20, %s1985_s20   ;;  %s1393_s19 = sphi %s1448_s19, %s1984_s19   ;;  %s1389_s18 = sphi %s1446_s18, %s1983_s18  }
   0xa   : > { %p47_p0 = scmp.ne.s32.totalorder %s1393_s19, %s1389_s18  ;;  %p1964_p1 = scmp.eq.s32.totalorder %s1467_s22, 0 }
   0xb   : > { %p140_p3 = scmp.eq.s32.totalorder %s911_s23, 1  ;;  %p912_p5 = scmp.ge.s32.totalorder %s1401_s21, 1 }
   0xc   : > { %p1476_p4 = por %p1964_p1, %p47_p0  ;;  %p173_p7 = scmp.lt.s32.totalorder %s1401_s21, 3 }
   0xd   : > { %p1481_p6 = por %p140_p3, %p47_p0  ;;  %s1403_s27 = smov [#allocation5]  }
   0xe   : > { %s1967_s24 = scalar_select %p1476_p4, 1, 0 }
   0xf   : > { %s1968_s25 = scalar_select %p1481_p6, 1, 0 }
  0x10   : > { %p1486_p8 = pnand %p912_p5, %p173_p7  ;;  %s185_s28 = sshll.u32 %s1403_s27, 4  ;;  %s1490_s28 = int_to_ptr.vmem [resolvable:$true] %s185_s28 }
  0x11   : > { %s1404_s30 = smov [#allocation7]   ;;  %s1405_s7 = smov [#allocation8]  }
  0x12   : > { %s1969_s26 = scalar_select %p1486_p8, 1, 0 }
  0x13   : > { %p1092_p9 = pneg %p1486_p8  ;;  %s198_s6 = sshll.u32 %s1404_s30, 4  ;;  %s1501_s6 = int_to_ptr.vmem [resolvable:$true] %s198_s6 }
  0x14   : > { %s1503_s8 = sshll.u32 %s1405_s7, 4  ;;  %s1181_s11 = scalar_lea.hbm %s1959_s1, 1024  ;;  %s212_s8 = int_to_ptr.vmem [resolvable:$true] %s1503_s8 }
  0x15   : > { %p1497_p11 = pnand %p1092_p9, %p1964_p1  ;;  %p1182_p12 = scmp.ne.s32.totalorder %s1959_s1, %s1181_s11 }
  0x16   : > { %p1188_p5 = scmp.lt.u32.totalorder %s1181_s11, %s1959_s1 }
  0x17   : > { %p1513_p13 = pneg %p1497_p11 }
  0x19   : > { %p1184_p0 = pnand %p1513_p13, %p1182_p12 }
  0x1b   : > { %p1185_p3 = pneg %p1184_p0 }
  0x1d   : > { %p1190_p7 = pnand %p1188_p5, %p1185_p3 }
  0x1f   : > { %1193 = shalt.err (!%p1190_p7)
}
  0x20   : > { %s1194_s17 = scalar_lea.vmem %s1490_s28, 1024  ;;  %p1202_p2 = scmp.lt.s32.totalorder %s1490_s28, %s1490_s28 }
  0x21   : > { %p1195_p9 = scmp.ne.s32.totalorder %s1490_s28, %s1194_s17  ;;  %p1203_p6 = scmp.lt.s32.totalorder %s1194_s17, %s1194_s17 }
  0x23   : > { %p1197_p10 = pnand %p1195_p9, %p1513_p13  ;;  %p1204_p12 = por %p1203_p6, %p1202_p2 }
  0x25   : > { %p1198_p1 = pneg %p1197_p10 }
  0x27   : > { %p1205_p0 = pnand %p1204_p12, %p1198_p1 }
  0x29   : > { %1208 = shalt.err (!%p1205_p0)
}
  0x2a   : > { %s1406_s23 = smov 128   ;;  %s1407_s27 = smov 8  }
  0x2b   : > { %1095 = dma.hbm_to_vmem [thread:$0]  (!%p1497_p11), %s1959_s1, 1024, %s1490_s28, [#allocation6], %s1406_s23, %s1406_s23, %s1407_s27  }
  0x2c   : > { %s1209_s11 = scalar_lea.hbm %s1960_s2, 1024 }
  0x2d   : > { %p1210_p1 = scmp.ne.s32.totalorder %s1960_s2, %s1209_s11  ;;  %p1216_p10 = scmp.lt.u32.totalorder %s1209_s11, %s1960_s2 }
  0x2f   : > { %p1212_p2 = pnand %p1210_p1, %p1513_p13 }
  0x31   : > { %p1213_p6 = pneg %p1212_p2 }
  0x33   : > { %p1218_p3 = pnand %p1216_p10, %p1213_p6 }
  0x35   : > { %1221 = shalt.err (!%p1218_p3)
}
  0x36   : > { %s1222_s28 = scalar_lea.vmem %s1501_s6, 1024  ;;  %p1230_p12 = scmp.lt.s32.totalorder %s1501_s6, %s1501_s6 }
  0x37   : > { %p1223_p5 = scmp.ne.s32.totalorder %s1501_s6, %s1222_s28  ;;  %p1231_p0 = scmp.lt.s32.totalorder %s1222_s28, %s1222_s28 }
  0x39   : > { %p1225_p7 = pnand %p1223_p5, %p1513_p13  ;;  %p1232_p1 = por %p1231_p0, %p1230_p12 }
  0x3b   : > { %p1226_p9 = pneg %p1225_p7 }
  0x3d   : > { %p1233_p2 = pnand %p1232_p1, %p1226_p9 }
  0x3f   : > { %1236 = shalt.err (!%p1233_p2)
}
  0x40   : > { %1098 = dma.hbm_to_vmem [thread:$0]  (!%p1497_p11), %s1960_s2, 1024, %s1501_s6, [#allocation6], %s1406_s23, %s1406_s23, %s1407_s27  }
  0x41   : > { %s1237_s10 = scalar_lea.hbm %s1961_s3, 1024 }
  0x42   : > { %p1238_p6 = scmp.ne.s32.totalorder %s1961_s3, %s1237_s10  ;;  %p1244_p5 = scmp.lt.u32.totalorder %s1237_s10, %s1961_s3 }
  0x44   : > { %p1240_p10 = pnand %p1238_p6, %p1513_p13 }
  0x46   : > { %p1241_p3 = pneg %p1240_p10 }
  0x48   : > { %p1246_p7 = pnand %p1244_p5, %p1241_p3 }
  0x4a   : > { %1249 = shalt.err (!%p1246_p7)
}
  0x4b   : > { %s1250_s16 = scalar_lea.vmem %s212_s8, 1024  ;;  %p1258_p1 = scmp.lt.s32.totalorder %s212_s8, %s212_s8 }
  0x4c   : > { %p1251_p9 = scmp.ne.s32.totalorder %s212_s8, %s1250_s16  ;;  %p1259_p2 = scmp.lt.s32.totalorder %s1250_s16, %s1250_s16 }
  0x4e   : > { %p1253_p12 = pnand %p1251_p9, %p1513_p13  ;;  %p1260_p4 = por %p1259_p2, %p1258_p1 }
  0x50   : > { %p1254_p0 = pneg %p1253_p12 }
  0x52   : > { %p1261_p8 = pnand %p1260_p4, %p1254_p0 }
  0x54   : > { %1264 = shalt.err (!%p1261_p8)
}
  0x55   : > { %1101 = dma.hbm_to_vmem [thread:$0]  (!%p1497_p11), %s1961_s3, 1024, %s212_s8, [#allocation9], %s1406_s23, %s1406_s23, %s1407_s27  }
  0x56   : > { %s1586_s14 = sadd.s32 1, %s1401_s21   ;;  %s34_s17 = sadd.s32 1, %s1397_s20 }
  0x57   : > { %s31_s29 = ssub.s32 %s1401_s21, %s1586_s14  ;;  %p41_p8 = scmp.ne.s32.totalorder %s1397_s20, %s1393_s19 }
  0x58   : > { %p32_p4 = scmp.eq.s32.totalorder %s31_s29, 0  ;;  %p42_p13 = scmp.eq.s32.totalorder %s1401_s21, 0 }
  0x59   : > { %p1116_p6 = scmp.lt.s32.totalorder %s1401_s21, 2  ;;  %p1972_p3 = scmp.eq.s32.totalorder %s1467_s22, 1 }
  0x5a   : > { %s1596_s30 = scalar_select %p32_p4, %s1397_s20, %s34_s17  }
  0x5b   : > { %p43_p10 = por %p42_p13, %p41_p8  ;;  %p1600_p5 = por %p1972_p3, %p41_p8 }
  0x5c   : > { %s225_s9 = sand.u32 1, %s1397_s20   ;;  %s951_s10 = sshll.u32 %s1401_s21, 11 }
  0x5d   : > { %s917_s8 = sshll.u32 %s225_s9, 7  ;;  %s1609_s11 = scalar_lea.hbm %s1958_s0, %s951_s10 }
  0x5e   : > { %s229_s12 = scalar_lea.vmem [#allocation2], %s917_s8  ;;  %p1611_p11 = pnand %p1116_p6, %p43_p10 }
  0x5f   : > { %s236_s13 = sshll.u32 %s229_s12, 4  ;;  %s1617_s16 = scalar_lea.sflag [#allocation3], %s225_s9  ;;  %s1615_s13 = int_to_ptr.vmem [resolvable:$true] %s236_s13 }
  0x60   : > { %s1265_s6 = scalar_lea.hbm %s1609_s11, 2048  ;;  %p1267_p9 = pneg %p1611_p11 }
  0x61   : > { %p1266_p7 = scmp.ne.s32.totalorder %s1609_s11, %s1265_s6  ;;  %s1270_s17 = scalar_lea.hbm %s1958_s0, 4096 }
  0x62   : > { %p1271_p1 = scmp.lt.u32.totalorder %s1609_s11, %s1958_s0  ;;  %p1272_p2 = scmp.lt.u32.totalorder %s1270_s17, %s1265_s6 }
  0x63   : > { %p1268_p12 = pnand %p1267_p9, %p1266_p7  ;;  %p1274_p8 = scmp.lt.u32.totalorder %s1265_s6, %s1609_s11 }
  0x64   : > { %p1273_p4 = por %p1272_p2, %p1271_p1 }
  0x65   : > { %p1269_p0 = pneg %p1268_p12 }
  0x66   : > { %p1275_p13 = por %p1274_p8, %p1273_p4 }
  0x68   : > { %p1276_p6 = pnand %p1275_p13, %p1269_p0 }
  0x6a   : > { %1279 = shalt.err (!%p1276_p6)
}
  0x6b   : > { %s1280_s9 = scalar_lea.vmem %s1615_s13, 2048  ;;  %s1408_s23 = smov [#allocation2]  }
  0x6c   : > { %p1281_p10 = scmp.ne.s32.totalorder %s1615_s13, %s1280_s9  ;;  %s1285_s27 = sshll.u32 %s1408_s23, 4  ;;  %s1286_s27 = int_to_ptr.vmem [resolvable:$false] %s1285_s27 }
  0x6d   : > { %s1287_s12 = scalar_lea.vmem %s1286_s27, 4096  ;;  %p1288_p12 = scmp.lt.s32.totalorder %s1615_s13, %s1286_s27 }
  0x6e   : > { %p1283_p3 = pnand %p1281_p10, %p1267_p9  ;;  %p1289_p1 = scmp.lt.s32.totalorder %s1287_s12, %s1280_s9 }
  0x70   : > { %p1284_p7 = pneg %p1283_p3  ;;  %p1290_p2 = por %p1289_p1, %p1288_p12 }
  0x72   : > { %p1291_p4 = pnand %p1290_p2, %p1284_p7 }
  0x74   : > { %1294 = shalt.err (!%p1291_p4)
}
  0x75   : > { %s1409_s6 = smov 256   ;;  %s1410_s28 = smov 16  }
  0x76   : > { %1105 = dma.hbm_to_vmem [thread:$0]  (!%p1611_p11), %s1609_s11, 2048, %s1615_s13, %s1617_s16, %s1409_s6, %s1409_s6, %s1410_s28  }
  0x77   : > { %p1975_p9 = scmp.ne.s32.totalorder %s1969_s26, 0 }
  0x78   : > { %s1648_s29 = sand.u32 (!%p1975_p9), 1, %s1393_s19   ;;  %p1976_p0 = scmp.ne.s32.totalorder (!%p1975_p9), %s1967_s24, 0 }
  0x79   : > { %248 = sbr.rel (%p1975_p9) target bundleno = 1101 (0x44d), region = 36  ;;  %s921_s17 = sshll.u32 (!%p1975_p9), %s1648_s29, 7 }
  0x7a   : > { %s251_s10 = scalar_lea.sflag (!%p1975_p9), [#allocation3], %s1648_s29  ;;  %s1652_s8 = scalar_lea.vmem (!%p1975_p9), [#allocation2], %s921_s17 }
  0x80   : > { %1368 = dma.done.wait (%p1976_p0), %s251_s10, 2048  }
  0x81   : > { %1370 = vsyncadd (%p1976_p0), %s251_s10, 4294965248  ;;  %p1977_p11 = scmp.eq.s32.totalorder %s1467_s22, 0 }
  0x83   : > { %1372 = dma.done.wait (%p1977_p11), [#allocation6], 2048   ;;  %p1978_p8 = pmov %p1977_p11 }
  0x85   : > { %1374 = vsyncadd (%p1978_p8), [#allocation6], 4294965248  ;;  %p1979_p13 = pmov %p1978_p8 }
  0x86   : > { %p1980_p6 = pmov %p1978_p8 }
  0x87   : > { %1376 = dma.done.wait (%p1979_p13), [#allocation9], 1024  }
  0x88   : > { %1378 = vsyncadd (%p1980_p6), [#allocation9], 4294966272  ;;  %v1667_v0 = vld [vmem:[%s1652_s8 + $0x20] sm:$0xff]  ;;  %v1670_v1 = vld [vmem:[%s1652_s8 + $0x28] sm:$0xff]  ;;  %vm346_vm0 = vcmask 523264   ;;  %v1411_v25 = vmov 0  }
  0x89   : > { %v1673_v2 = vld [vmem:[%s1652_s8] sm:$0xff]  ;;  %v320_v3 = vadd.f32 %v1670_v1, %v1667_v0  ;;  %v1678_v4 = vld [vmem:[%s1652_s8 + $0x8] sm:$0xff]  ;;  %v1681_v5 = vld [vmem:[%s1652_s8 + $0x30] sm:$0xff]  ;;  %1164 = vset.pattern.permute.xlu1 %v1411_v25  ;;  %1163 = vset.pattern.permute.xlu0 %v1411_v25  ;;  %s925_s24 = sshll.u32 %s1648_s29, 6  ;;  %vm701_vm1 = vcmask 7168   ;;  %s952_s13 = sshll.u32 %s1467_s22, 10 }
  0x8a   : > { %v1684_v6 = vld [vmem:[%s1652_s8 + $0x38] sm:$0xff]  ;;  %v314_v7 = vadd.f32 %v1678_v4, %v1673_v2  ;;  %v1689_v8 = vld [vmem:[%s1652_s8 + $0x10] sm:$0xff]  ;;  %v1705_v14 = vld [vmem:[%s1652_s8 + $0x40] sm:$0xff]  ;;  %s1817_s26 = scalar_lea.vmem [#allocation10], %s925_s24  ;;  %s1827_s11 = scalar_lea.vmem [#allocation11], %s925_s24 }
  0x8b   : > { %v1692_v9 = vld [vmem:[%s1652_s8 + $0x18] sm:$0xff]  ;;  %321 = vadd.xlane.f32.xlu1 %v320_v3  ;;  %v323_v10 = vadd.f32 %v1684_v6, %v1681_v5  ;;  %v1699_v12 = vld [vmem:[%s1652_s8 + $0x50] sm:$0xff]  ;;  %v1708_v15 = vld [vmem:[%s1652_s8 + $0x48] sm:$0xff]  ;;  %s761_s15 = sshll.u32 %s1817_s26, 4  ;;  %s1856_s23 = scalar_lea.hbm %s1962_s4, %s952_s13  ;;  %s1858_s15 = int_to_ptr.vmem [resolvable:$true] %s761_s15 }
  0x8c   : > { %315 = vadd.xlane.f32.xlu0 %v314_v7  ;;  %v317_v11 = vadd.f32 %v1692_v9, %v1689_v8  ;;  %v1702_v13 = vld [vmem:[%s1652_s8 + $0x58] sm:$0xff]  ;;  %v326_v17 = vadd.f32 %v1708_v15, %v1705_v14  ;;  %v1715_v18 = vld [vmem:[%s1652_s8 + $0x70] sm:$0xff]  ;;  %v1721_v20 = vld [vmem:[%s1652_s8 + $0x60] sm:$0xff]  ;;  %s777_s27 = sshll.u32 %s1827_s11, 4  ;;  %s743_s12 = scalar_lea.sflag [#allocation4], %s1648_s29  ;;  %s1907_s27 = int_to_ptr.vmem [resolvable:$true] %s777_s27 }
  0x8d   : > { %v329_v16 = vadd.f32 %v1702_v13, %v1699_v12  ;;  %v1718_v19 = vld [vmem:[%s1652_s8 + $0x78] sm:$0xff]  ;;  %v1724_v21 = vld [vmem:[%s1652_s8 + $0x68] sm:$0xff]  ;;  %v338_v24 = vld [vmem:[#allocation5] sm:$0xff]  ;;  %s1295_s6 = scalar_lea.vmem %s1858_s15, 1024  ;;  %s1412_s28 = smov [#allocation10]  }
  0x8e   : > { %v335_v22 = vadd.f32 %v1718_v19, %v1715_v18  ;;  %v332_v23 = vadd.f32 %v1724_v21, %v1721_v20  ;;  %1002 = vmatprep.mubr.msk.f32.mxu0 %vm346_vm0, %v338_v24  ;;  %1030 = vmatprep.mubr.msk.f32.mxu1 %vm346_vm0, %v338_v24  ;;  %v1732_v38 = vld [vmem:[#allocation5 + $0x8] sm:$0xff]  ;;  %v1734_v39 = vld [vmem:[#allocation5 + $0x10] sm:$0xff]  ;;  %v1740_v40 = vld [vmem:[#allocation5 + $0x18] sm:$0xff]  ;;  %p1296_p10 = scmp.ne.s32.totalorder %s1858_s15, %s1295_s6  ;;  %s1299_s17 = sshll.u32 %s1412_s28, 4  ;;  %s1300_s17 = int_to_ptr.vmem [resolvable:$false] %s1299_s17 }
  0x8f   : > { %324 = vadd.xlane.f32.xlu1 %v323_v10  ;;  %v1742_v41 = vld [vmem:[#allocation5 + $0x20] sm:$0xff]  ;;  %v1748_v42 = vld [vmem:[#allocation5 + $0x28] sm:$0xff]  ;;  %v1750_v43 = vld [vmem:[#allocation5 + $0x30] sm:$0xff]  ;;  %s1301_s10 = scalar_lea.vmem %s1300_s17, 2048  ;;  %p1302_p12 = scmp.lt.s32.totalorder %s1858_s15, %s1300_s17 }
  0x90   : > { %318 = vadd.xlane.f32.xlu0 %v317_v11  ;;  %v1756_v44 = vld [vmem:[#allocation5 + $0x38] sm:$0xff]  ;;  %p1297_p3 = pnand %p1296_p10, %p1600_p5  ;;  %p1303_p1 = scmp.lt.s32.totalorder %s1301_s10, %s1295_s6 }
  0x92   : > { %p1298_p7 = pneg %p1297_p3  ;;  %p1304_p2 = por %p1303_p1, %p1302_p12 }
  0x93   : > { %330 = vadd.xlane.f32.xlu1 %v329_v16 }
  0x94   : > { %327 = vadd.xlane.f32.xlu0 %v326_v17  ;;  %p1305_p4 = pnand %p1304_p2, %p1298_p7 }
  0x97   : > { %336 = vadd.xlane.f32.xlu1 %v335_v22 }
  0x98   : > { %333 = vadd.xlane.f32.xlu0 %v332_v23 }
 0x118   : > { %v322_v26 = vpop.xlane.xlu1 %321 }
 0x119   : > { %v316_v27 = vpop.xlane.xlu0 %315 }
 0x11c   : > { %v325_v28 = vpop.xlane.xlu1 %324 }
 0x11d   : > { %v319_v29 = vpop.xlane.xlu0 %318  ;;  %v1046_v31 = vpack.c.bf16 %v325_v28, %v322_v26 }
 0x11e   : > { %v1042_v30 = vpack.c.bf16 %v319_v29, %v316_v27 }
 0x120   : > { %1043 = vmatprep.subr.bf16.mxu0 %v1042_v30  ;;  %v331_v32 = vpop.xlane.xlu1 %330 }
 0x121   : > { %1045 = vmatpush3.bf16.msra.mxu0 %v1042_v30  ;;  %v328_v33 = vpop.xlane.xlu0 %327 }
 0x122   : > { %1047 = vmatprep.subr.bf16.mxu0 %v1046_v31  ;;  %v1050_v34 = vpack.c.bf16 %v331_v32, %v328_v33 }
 0x124   : > { %v337_v35 = vpop.xlane.xlu1 %336 }
 0x125   : > { %1049 = vmatpush3.bf16.msra.mxu0 %v1046_v31  ;;  %v334_v36 = vpop.xlane.xlu0 %333 }
 0x126   : > { %1051 = vmatprep.subr.bf16.mxu0 %v1050_v34  ;;  %v1054_v37 = vpack.c.bf16 %v337_v35, %v334_v36 }
 0x129   : > { %1053 = vmatpush3.bf16.msra.mxu0 %v1050_v34 }
 0x12a   : > { %1055 = vmatprep.subr.bf16.mxu0 %v1054_v37 }
 0x12d   : > { %1057 = vmatpush3.bf16.msra.mxu0 %v1054_v37 }
 0x130   : > { %1003 = vmatmul.mubr.msk.f32.vlgmr.msra.gmra.mrb[0].mxu0 %vm346_vm0, %v1732_v38 }
 0x131   : > { %1005 = vmatprep.mubr.msk.f32.mxu0 %vm346_vm0, %v1734_v39 }
 0x134   : > { %1006 = vmatmul.mubr.msk.f32.gmra.mrb[2].mxu0 %vm346_vm0, %v1740_v40 }
 0x135   : > { %1008 = vmatprep.mubr.msk.f32.mxu0 %vm346_vm0, %v1742_v41 }
 0x138   : > { %1009 = vmatmul.mubr.msk.f32.gmra.mrb[4].mxu0 %vm346_vm0, %v1748_v42 }
 0x139   : > { %1011 = vmatprep.mubr.msk.f32.mxu0 %vm346_vm0, %v1750_v43 }
 0x13c   : > { %1012 = vmatmul.mubr.msk.f32.gmra.mrb[6].mxu0 %vm346_vm0, %v1756_v44 }
 0x203   : > { %v1760_v45 = vpop.f32.mrb[0].mxu0 }
 0x204   : > { %483 = vperm.xlu1 %1164, %v1760_v45   ;;  %v1763_v46 = vpop.f32.mrb[1].mxu0 }
 0x205   : > { %478 = vperm.xlu0 %1163, %v1763_v46  }
 0x207   : > { %v1766_v47 = vpop.f32.mrb[2].mxu0 }
 0x208   : > { %493 = vperm.xlu1 %1164, %v1766_v47   ;;  %v1769_v48 = vpop.f32.mrb[3].mxu0 }
 0x20b   : > { %v1771_v49 = vpop.f32.mrb[4].mxu0 }
 0x20c   : > { %488 = vperm.xlu1 %1164, %v1769_v48   ;;  %v1774_v50 = vpop.f32.mrb[5].mxu0 }
 0x20f   : > { %v1776_v51 = vpop.f32.mrb[6].mxu0 }
 0x210   : > { %503 = vperm.xlu1 %1164, %v1771_v49   ;;  %v1779_v52 = vpop.f32.mrb[7].mxu0 }
 0x214   : > { %498 = vperm.xlu1 %1164, %v1774_v50  }
 0x218   : > { %508 = vperm.xlu1 %1164, %v1779_v52  }
 0x21c   : > { %513 = vperm.xlu1 %1164, %v1776_v51  }
 0x283   : > { %v484_v53 = vpop.permute.xlu1 %483 }
 0x284   : > { %v518_v54 = vsub.f32 %v1689_v8, %v484_v53  ;;  %v519_v55 = vsub.f32 %v1692_v9, %v484_v53  ;;  %v479_v56 = vpop.permute.xlu0 %478 }
 0x285   : > { %v516_v57 = vsub.f32 %v1673_v2, %v479_v56  ;;  %v517_v58 = vsub.f32 %v1678_v4, %v479_v56 }
 0x286   : > { %v534_v59 = vmul.f32 %v518_v54, %v518_v54  ;;  %v535_v60 = vmul.f32 %v519_v55, %v519_v55 }
 0x287   : > { %v532_v61 = vmul.f32 %v516_v57, %v516_v57  ;;  %v533_v62 = vmul.f32 %v517_v58, %v517_v58  ;;  %v494_v63 = vpop.permute.xlu1 %493 }
 0x288   : > { %v522_v3 = vsub.f32 %v1681_v5, %v494_v63  ;;  %v523_v7 = vsub.f32 %v1684_v6, %v494_v63  ;;  %v551_v10 = vadd.f32 %v535_v60, %v534_v59 }
 0x289   : > { %v548_v11 = vadd.f32 %v533_v62, %v532_v61 }
 0x28a   : > { %v538_v16 = vmul.f32 %v522_v3, %v522_v3  ;;  %v539_v8 = vmul.f32 %v523_v7, %v523_v7  ;;  %552 = vadd.xlane.f32.xlu0 %v551_v10 }
 0x28b   : > { %v489_v9 = vpop.permute.xlu1 %488  ;;  %549 = vadd.xlane.f32.xlu1 %v548_v11 }
 0x28c   : > { %v520_v2 = vsub.f32 %v1667_v0, %v489_v9  ;;  %v521_v4 = vsub.f32 %v1670_v1, %v489_v9  ;;  %v557_v17 = vadd.f32 %v539_v8, %v538_v16  ;;  %v686_v9 = vld [vmem:[#allocation7 + $0x8] sm:$0xff] }
 0x28e   : > { %v536_v22 = vmul.f32 %v520_v2, %v520_v2  ;;  %v537_v23 = vmul.f32 %v521_v4, %v521_v4 }
 0x28f   : > { %v504_v24 = vpop.permute.xlu1 %503  ;;  %558 = vadd.xlane.f32.xlu1 %v557_v17 }
 0x290   : > { %v526_v5 = vsub.f32 %v1699_v12, %v504_v24  ;;  %v527_v6 = vsub.f32 %v1702_v13, %v504_v24  ;;  %v554_v25 = vadd.f32 %v537_v23, %v536_v22 }
 0x292   : > { %v542_v26 = vmul.f32 %v526_v5, %v526_v5  ;;  %v543_v27 = vmul.f32 %v527_v6, %v527_v6  ;;  %555 = vadd.xlane.f32.xlu0 %v554_v25  ;;  %v711_v6 = vld [vmem:[#allocation8 + $0x8] sm:$0xff] }
 0x293   : > { %v499_v28 = vpop.permute.xlu1 %498 }
 0x294   : > { %v524_v29 = vsub.f32 %v1705_v14, %v499_v28  ;;  %v525_v0 = vsub.f32 %v1708_v15, %v499_v28  ;;  %v563_v30 = vadd.f32 %v543_v27, %v542_v26  ;;  %v688_v26 = vld [vmem:[#allocation7 + $0x18] sm:$0xff]  ;;  %v710_v28 = vld [vmem:[#allocation8] sm:$0xff] }
 0x296   : > { %v540_v1 = vmul.f32 %v524_v29, %v524_v29  ;;  %v541_v31 = vmul.f32 %v525_v0, %v525_v0  ;;  %564 = vadd.xlane.f32.xlu1 %v563_v30  ;;  %v687_v29 = vld [vmem:[#allocation7 + $0x10] sm:$0xff] }
 0x297   : > { %v509_v32 = vpop.permute.xlu1 %508 }
 0x298   : > { %v528_v33 = vsub.f32 %v1721_v20, %v509_v32  ;;  %v529_v12 = vsub.f32 %v1724_v21, %v509_v32  ;;  %v560_v34 = vadd.f32 %v541_v31, %v540_v1 }
 0x29a   : > { %v544_v13 = vmul.f32 %v528_v33, %v528_v33  ;;  %v545_v35 = vmul.f32 %v529_v12, %v529_v12  ;;  %561 = vadd.xlane.f32.xlu0 %v560_v34  ;;  %v713_v12 = vld [vmem:[#allocation8 + $0x18] sm:$0xff] }
 0x29b   : > { %v514_v36 = vpop.permute.xlu1 %513 }
 0x29c   : > { %v530_v37 = vsub.f32 %v1715_v18, %v514_v36  ;;  %v531_v14 = vsub.f32 %v1718_v19, %v514_v36  ;;  %v566_v53 = vadd.f32 %v545_v35, %v544_v13  ;;  %v690_v13 = vld [vmem:[#allocation7 + $0x28] sm:$0xff]  ;;  %v689_v35 = vld [vmem:[#allocation7 + $0x20] sm:$0xff] }
 0x29e   : > { %v546_v15 = vmul.f32 %v530_v37, %v530_v37  ;;  %v547_v54 = vmul.f32 %v531_v14, %v531_v14  ;;  %567 = vadd.xlane.f32.xlu0 %v566_v53 }
 0x2a0   : > { %v569_v55 = vadd.f32 %v547_v54, %v546_v15 }
 0x2a2   : > { %570 = vadd.xlane.f32.xlu1 %v569_v55  ;;  %v715_v55 = vld [vmem:[#allocation8 + $0x28] sm:$0xff] }
 0x317   : > { %v553_v56 = vpop.xlane.xlu0 %552 }
 0x318   : > { %v550_v57 = vpop.xlane.xlu1 %549 }
 0x319   : > { %v1058_v20 = vpack.c.bf16 %v553_v56, %v550_v57 }
 0x31b   : > { %1059 = vmatprep.subr.bf16.mxu1 %v1058_v20 }
 0x31c   : > { %1061 = vmatpush3.bf16.msra.mxu1 %v1058_v20  ;;  %v559_v21 = vpop.xlane.xlu1 %558  ;;  %v691_v20 = vld [vmem:[#allocation7 + $0x30] sm:$0xff] }
 0x31f   : > { %v556_v58 = vpop.xlane.xlu0 %555 }
 0x320   : > { %v1062_v59 = vpack.c.bf16 %v559_v21, %v556_v58 }
 0x322   : > { %1063 = vmatprep.subr.bf16.mxu1 %v1062_v59 }
 0x323   : > { %1065 = vmatpush3.bf16.msra.mxu1 %v1062_v59  ;;  %v565_v60 = vpop.xlane.xlu1 %564 }
 0x327   : > { %v562_v18 = vpop.xlane.xlu0 %561 }
 0x328   : > { %v1066_v61 = vpack.c.bf16 %v565_v60, %v562_v18 }
 0x32a   : > { %1067 = vmatprep.subr.bf16.mxu1 %v1066_v61 }
 0x32b   : > { %1069 = vmatpush3.bf16.msra.mxu1 %v1066_v61  ;;  %v568_v19 = vpop.xlane.xlu0 %567  ;;  %v717_v61 = vld [vmem:[#allocation8 + $0x38] sm:$0xff] }
 0x32f   : > { %v571_v62 = vpop.xlane.xlu1 %570 }
 0x330   : > { %v1070_v63 = vpack.c.bf16 %v571_v62, %v568_v19  ;;  %v716_v62 = vld [vmem:[#allocation8 + $0x30] sm:$0xff] }
 0x332   : > { %1071 = vmatprep.subr.bf16.mxu1 %v1070_v63 }
 0x333   : > { %1073 = vmatpush3.bf16.msra.mxu1 %v1070_v63 }
 0x336   : > { %1031 = vmatmul.mubr.msk.f32.vlgmr.msra.gmra.mrb[0].mxu1 %vm346_vm0, %v1732_v38 }
 0x337   : > { %1033 = vmatprep.mubr.msk.f32.mxu1 %vm346_vm0, %v1734_v39 }
 0x33a   : > { %1034 = vmatmul.mubr.msk.f32.gmra.mrb[2].mxu1 %vm346_vm0, %v1740_v40 }
 0x33b   : > { %1036 = vmatprep.mubr.msk.f32.mxu1 %vm346_vm0, %v1742_v41 }
 0x33e   : > { %1037 = vmatmul.mubr.msk.f32.gmra.mrb[4].mxu1 %vm346_vm0, %v1748_v42 }
 0x33f   : > { %1039 = vmatprep.mubr.msk.f32.mxu1 %vm346_vm0, %v1750_v43 }
 0x342   : > { %1040 = vmatmul.mubr.msk.f32.gmra.mrb[6].mxu1 %vm346_vm0, %v1756_v44  ;;  %v685_v44 = vld [vmem:[#allocation7] sm:$0xff] }
 0x409   : > { %v1032_v38 = vpop.f32.mrb[0].mxu1 }
 0x40a   : > { %v644_v3 = vadd.f32 1e-06, %v1032_v38  ;;  %v638_v7 = vpop.f32.mrb[1].mxu1 }
 0x40b   : > { %v639_v39 = vadd.f32 1e-06, %v638_v7 }
 0x40c   : > { %1165 = vrsqrt.f32 %v644_v3 }
 0x40d   : > { %1167 = vrsqrt.f32 %v639_v39  ;;  %v1035_v40 = vpop.f32.mrb[2].mxu1 }
 0x40e   : > { %v654_v10 = vadd.f32 1e-06, %v1035_v40  ;;  %v648_v11 = vpop.f32.mrb[3].mxu1 }
 0x40f   : > { %v649_v41 = vadd.f32 1e-06, %v648_v11 }
 0x410   : > { %1169 = vrsqrt.f32 %v654_v10 }
 0x411   : > { %1171 = vrsqrt.f32 %v649_v41  ;;  %v1038_v42 = vpop.f32.mrb[4].mxu1 }
 0x412   : > { %v664_v16 = vadd.f32 1e-06, %v1038_v42  ;;  %v658_v8 = vpop.f32.mrb[5].mxu1 }
 0x413   : > { %v659_v43 = vadd.f32 1e-06, %v658_v8 }
 0x414   : > { %1173 = vrsqrt.f32 %v664_v16 }
 0x415   : > { %1175 = vrsqrt.f32 %v659_v43  ;;  %v1041_v2 = vpop.f32.mrb[6].mxu1 }
 0x416   : > { %v1166_v4 = vpop.eup %1165  ;;  %v674_v17 = vadd.f32 1e-06, %v1041_v2  ;;  %v668_v22 = vpop.f32.mrb[7].mxu1 }
 0x417   : > { %v1168_v23 = vpop.eup %1167  ;;  %v694_v24 = vmul.f32 %v1166_v4, %v686_v9  ;;  %v669_v5 = vadd.f32 1e-06, %v668_v22 }
 0x418   : > { %v693_v25 = vmul.f32 %v1168_v23, %v685_v44  ;;  %1177 = vrsqrt.f32 %v674_v17 }
 0x419   : > { %703 = vst.msk [vmem:[%s1817_s26 + $0x8] sm:$0xff] %vm701_vm1, %v694_v24  ;;  %v719_v27 = vmul.f32 %v1760_v45, %v694_v24  ;;  %1179 = vrsqrt.f32 %v669_v5 }
 0x41a   : > { %v1170_v0 = vpop.eup %1169  ;;  %702 = vst.msk [vmem:[%s1817_s26] sm:$0xff] %vm701_vm1, %v693_v25  ;;  %v718_v30 = vmul.f32 %v693_v25, %v1763_v46  ;;  %v712_v46 = vld [vmem:[#allocation8 + $0x10] sm:$0xff] }
 0x41b   : > { %v1172_v1 = vpop.eup %1171  ;;  %v727_v31 = vsub.f32 %v711_v6, %v719_v27  ;;  %v696_v32 = vmul.f32 %v1170_v0, %v688_v26 }
 0x41c   : > { %v726_v33 = vsub.f32 %v710_v28, %v718_v30  ;;  %v695_v34 = vmul.f32 %v1172_v1, %v687_v29 }
 0x41d   : > { %735 = vst.msk [vmem:[%s1827_s11 + $0x8] sm:$0xff] %vm701_vm1, %v727_v31  ;;  %705 = vst.msk [vmem:[%s1817_s26 + $0x18] sm:$0xff] %vm701_vm1, %v696_v32  ;;  %v721_v45 = vmul.f32 %v1766_v47, %v696_v32  ;;  %v692_v47 = vld [vmem:[#allocation7 + $0x38] sm:$0xff] }
 0x41e   : > { %v1174_v36 = vpop.eup %1173  ;;  %734 = vst.msk [vmem:[%s1827_s11] sm:$0xff] %vm701_vm1, %v726_v33  ;;  %704 = vst.msk [vmem:[%s1817_s26 + $0x10] sm:$0xff] %vm701_vm1, %v695_v34  ;;  %v720_v37 = vmul.f32 %v695_v34, %v1769_v48  ;;  %v714_v48 = vld [vmem:[#allocation8 + $0x20] sm:$0xff] }
 0x41f   : > { %v1176_v14 = vpop.eup %1175  ;;  %v729_v53 = vsub.f32 %v713_v12, %v721_v45  ;;  %v698_v15 = vmul.f32 %v1174_v36, %v690_v13 }
 0x420   : > { %v728_v54 = vsub.f32 %v712_v46, %v720_v37  ;;  %v697_v56 = vmul.f32 %v1176_v14, %v689_v35 }
 0x421   : > { %737 = vst.msk [vmem:[%s1827_s11 + $0x18] sm:$0xff] %vm701_vm1, %v729_v53  ;;  %707 = vst.msk [vmem:[%s1817_s26 + $0x28] sm:$0xff] %vm701_vm1, %v698_v15  ;;  %v723_v57 = vmul.f32 %v1771_v49, %v698_v15 }
 0x422   : > { %v1178_v21 = vpop.eup %1177  ;;  %736 = vst.msk [vmem:[%s1827_s11 + $0x10] sm:$0xff] %vm701_vm1, %v728_v54  ;;  %706 = vst.msk [vmem:[%s1817_s26 + $0x20] sm:$0xff] %vm701_vm1, %v697_v56  ;;  %v722_v58 = vmul.f32 %v697_v56, %v1774_v50 }
 0x423   : > { %v1180_v59 = vpop.eup %1179  ;;  %v731_v60 = vsub.f32 %v715_v55, %v723_v57  ;;  %v700_v18 = vmul.f32 %v1178_v21, %v692_v47 }
 0x424   : > { %v730_v49 = vsub.f32 %v714_v48, %v722_v58  ;;  %v699_v19 = vmul.f32 %v1180_v59, %v691_v20 }
 0x425   : > { %739 = vst.msk [vmem:[%s1827_s11 + $0x28] sm:$0xff] %vm701_vm1, %v731_v60  ;;  %709 = vst.msk [vmem:[%s1817_s26 + $0x38] sm:$0xff] %vm701_vm1, %v700_v18  ;;  %v725_v50 = vmul.f32 %v1776_v51, %v700_v18 }
 0x426   : > { %738 = vst.msk [vmem:[%s1827_s11 + $0x20] sm:$0xff] %vm701_vm1, %v730_v49  ;;  %708 = vst.msk [vmem:[%s1817_s26 + $0x30] sm:$0xff] %vm701_vm1, %v699_v19  ;;  %v724_v63 = vmul.f32 %v699_v19, %v1779_v52 }
 0x427   : > { %v733_v38 = vsub.f32 %v717_v61, %v725_v50 }
 0x428   : > { %1308 = shalt.err (!%p1305_p4)
}
 0x429   : > { %s1309_s8 = scalar_lea.hbm %s1856_s23, 1024  ;;  %s1313_s16 = scalar_lea.hbm %s1962_s4, 2048 }
 0x42a   : > { %p1310_p9 = scmp.ne.s32.totalorder %s1856_s23, %s1309_s8  ;;  %p1314_p8 = scmp.lt.u32.totalorder %s1856_s23, %s1962_s4 }
 0x42b   : > { %p1315_p13 = scmp.lt.u32.totalorder %s1313_s16, %s1309_s8  ;;  %p1317_p10 = scmp.lt.u32.totalorder %s1309_s8, %s1856_s23 }
 0x42c   : > { %p1311_p0 = pnand %p1310_p9, %p1600_p5 }
 0x42d   : > { %p1316_p6 = por %p1315_p13, %p1314_p8 }
 0x42e   : > { %p1312_p11 = pneg %p1311_p0 }
 0x42f   : > { %p1318_p3 = por %p1317_p10, %p1316_p6 }
 0x431   : > { %p1319_p7 = pnand %p1318_p3, %p1312_p11 }
 0x433   : > { %1322 = shalt.err (!%p1319_p7)
}
 0x434   : > { %s1413_s6 = smov 128   ;;  %s1414_s17 = smov 8   ;;  %v732_v51 = vsub.f32 %v716_v62, %v724_v63  ;;  %741 = vst.msk [vmem:[%s1827_s11 + $0x38] sm:$0xff] %vm701_vm1, %v733_v38 }
 0x435   : > { %1088 = dma.vmem_to_hbm [thread:$0]  (%p1600_p5), %s1858_s15, 1024, %s1856_s23, %s743_s12, %s1413_s6, %s1413_s6, %s1414_s17  }
 0x436   : > { %s1903_s24 = scalar_lea.hbm %s1963_s5, %s952_s13  ;;  %740 = vst.msk [vmem:[%s1827_s11 + $0x30] sm:$0xff] %vm701_vm1, %v732_v51  ;;  %s748_s26 = scalar_lea.sflag [#allocation12], %s1648_s29 }
 0x437   : > { %s1323_s16 = scalar_lea.vmem %s1907_s27, 1024  ;;  %s1415_s22 = smov [#allocation11]  }
 0x438   : > { %p1324_p12 = scmp.ne.s32.totalorder %s1907_s27, %s1323_s16  ;;  %s1327_s15 = sshll.u32 %s1415_s22, 4  ;;  %s1328_s15 = int_to_ptr.vmem [resolvable:$false] %s1327_s15 }
 0x439   : > { %s1329_s13 = scalar_lea.vmem %s1328_s15, 2048  ;;  %p1330_p4 = scmp.lt.s32.totalorder %s1907_s27, %s1328_s15 }
 0x43a   : > { %p1325_p1 = pnand %p1324_p12, %p1600_p5  ;;  %p1331_p9 = scmp.lt.s32.totalorder %s1329_s13, %s1323_s16 }
 0x43c   : > { %p1326_p2 = pneg %p1325_p1  ;;  %p1332_p0 = por %p1331_p9, %p1330_p4 }
 0x43e   : > { %p1333_p11 = pnand %p1332_p0, %p1326_p2 }
 0x440   : > { %1336 = shalt.err (!%p1333_p11)
}
 0x441   : > { %s1337_s11 = scalar_lea.hbm %s1903_s24, 1024  ;;  %s1341_s9 = scalar_lea.hbm %s1963_s5, 2048 }
 0x442   : > { %p1338_p8 = scmp.ne.s32.totalorder %s1903_s24, %s1337_s11  ;;  %p1342_p10 = scmp.lt.u32.totalorder %s1903_s24, %s1963_s5 }
 0x443   : > { %p1343_p3 = scmp.lt.u32.totalorder %s1341_s9, %s1337_s11  ;;  %p1345_p12 = scmp.lt.u32.totalorder %s1337_s11, %s1903_s24 }
 0x444   : > { %p1339_p13 = pnand %p1338_p8, %p1600_p5 }
 0x445   : > { %p1344_p7 = por %p1343_p3, %p1342_p10 }
 0x446   : > { %p1340_p6 = pneg %p1339_p13 }
 0x447   : > { %p1346_p1 = por %p1345_p12, %p1344_p7 }
 0x449   : > { %p1347_p2 = pnand %p1346_p1, %p1340_p6 }
 0x44b   : > { %1350 = shalt.err (!%p1347_p2)
}
 0x44c   : > { %1089 = dma.vmem_to_hbm [thread:$0]  (%p1600_p5), %s1907_s27, 1024, %s1903_s24, %s748_s26, %s1413_s6, %s1413_s6, %s1414_s17  }
 0x44d PF: > { %s792_s8 = sand.u32 1, %s1389_s18   ;;  %p1981_p4 = scmp.ne.s32.totalorder %s1968_s25, 0 }
 0x44e   : > { %p1982_p9 = scmp.ge.s32.totalorder %s1401_s21, 2  ;;  %s793_s16 = scalar_lea.sflag [#allocation4], %s792_s8 }
 0x450   : > { %p1107_p0 = pnand %p1982_p9, %p1981_p4 }
 0x452   : > { %1380 = dma.done.wait (!%p1107_p0), %s793_s16, 1024  }
 0x453   : > { %1382 = vsyncadd (!%p1107_p0), %s793_s16, 4294966272  ;;  %s802_s7 = scalar_lea.sflag [#allocation12], %s792_s8 }
 0x454   : > { %1384 = dma.done.wait (!%p1107_p0), %s802_s7, 1024  }
 0x455   : > { %1386 = vsyncadd (!%p1107_p0), %s802_s7, 4294966272  ;;  %p24_p5 = scmp.ge.s32.totalorder %s1586_s14, 4   ;;  %s1983_s18 = smov %s1393_s19 }
 0x456   : > { %s1984_s19 = smov %s1397_s20  ;;  %s1985_s20 = smov %s1596_s30 }
 0x457   : > { %s1986_s21 = smov %s1586_s14  ;;  %26 = sbr.rel (!%p24_p5) target bundleno = 9 (0x9), region = 110 }
 0x45e   :  { %807 = vsyncpa [#allocation3], 1 }
 0x45f   :  { %809 = vsyncpa [#allocation3 + $0x1], 1 }
 0x460   :  { %810 = vsyncpa [#allocation6], 1 }
 0x461   :  { %811 = vsyncpa [#allocation9], 1 }
 0x462   :  { %812 = vsyncpa [#allocation4], 1 }
 0x463   :  { %814 = vsyncpa [#allocation4 + $0x1], 1 }
 0x464   :  { %815 = vsyncpa [#allocation12], 1 }
 0x465   :  { %817 = vsyncpa [#allocation12 + $0x1], 1 }

</bundles_post_ra>
